<compile_context>
chip_gen: v7x
topology: tpu7x:2x2x1
jax: 0.10.0
libtpu: 0.0.40
codegen_flags: <defaults>
</compile_context>

<pallas_src>
import jax
import jax.numpy as jnp
import numpy as np
from jax import lax
from jax.experimental import pallas as pl
from jax.experimental.pallas import tpu as pltpu

block_size = 64     # max sequence length supported by the causal mask
n_embd = 384
head_size = 32


def head_kernel(x_ref, wqkv_ref, o_ref):
    # x_ref: (Bb, T, C) block of Bb batch elements; wqkv_ref: (C, 3H) resident weights
    # (q-scale folded in, pre-transposed, pre-concatenated, compute dtype).
    Bb, T, C = x_ref.shape
    H = o_ref.shape[-1]
    cdt = x_ref.dtype            # compute dtype (bf16 by default), f32 accumulation

    # Fused QKV projection: one (Bb*T, C) x (C, 3H) MXU matmul, f32 accumulation.
    x2d = x_ref[...].reshape(Bb * T, C)
    qkv = jnp.dot(x2d, wqkv_ref[...], preferred_element_type=jnp.float32)   # (Bb*T, 3H)
    # Back to compute dtype for the small per-batch attention matmuls (native MXU rate,
    # halves vreg pressure on the (Bb, T, 3H) tile).
    qkv = qkv.reshape(Bb, T, 3 * H).astype(cdt)
    q = qkv[:, :, 0:H]            # 1/sqrt(H) scale is pre-folded into the query weight
    k = qkv[:, :, H:2 * H]
    v = qkv[:, :, 2 * H:3 * H]

    # Attention scores per batch element: (Bb, T, T), f32.
    wei = jnp.einsum('bth,bsh->bts', q, k, preferred_element_type=jnp.float32)

    # Causal mask (tril): position t attends only to s <= t.
    row = lax.broadcasted_iota(jnp.int32, (T, T), 0)
    col = lax.broadcasted_iota(jnp.int32, (T, T), 1)
    wei = jnp.where((col <= row)[None], wei, -jnp.inf)

    # Softmax over the last axis (f32; EUP exp, exact divide for the denominator).
    wei = wei - jnp.max(wei, axis=-1, keepdims=True)
    p = jnp.exp(wei)
    p = p / jnp.sum(p, axis=-1, keepdims=True)

    # Dropout: identity (eval mode).

    out = jnp.einsum('bts,bsh->bth', p.astype(cdt), v,
                     preferred_element_type=jnp.float32)                    # (Bb, T, H)
    o_ref[...] = out.astype(o_ref.dtype)


def head_forward(x, w_key, w_query, w_value, *,
                 batch_block=32, compute_dtype=jnp.bfloat16, out_dtype=None):
    """Single-head causal self-attention forward.

    In a full model, pass `x` already in `compute_dtype` (bf16) so the wrapper cast
    below is a no-op; here we cast from the caller's dtype for convenience.
    """
    B, T, C = x.shape
    H = w_key.shape[0]
    assert C == n_embd and T <= block_size
    out_dtype = out_dtype if out_dtype is not None else x.dtype

    # Weight plumbing (free, outside the grid loop): fold 1/sqrt(H) into W_query,
    # transpose each weight to (C, H), concat to (C, 3H), cast to compute dtype.
    scale = float(H) ** -0.5
    wqkv = jnp.concatenate(
        [(w_query * scale).T, w_key.T, w_value.T], axis=1
    ).astype(compute_dtype)                                        # (C, 3H)

    xc = x.astype(compute_dtype)

    # Batch tile: as large as batch_block allows, but keep at least 2 grid steps when
    # B >= 2 so the "parallel" axis shards across both TensorCores on v7x.
    if B >= 2:
        Bb = max(1, min(batch_block, pl.cdiv(B, 2)))
    else:
        Bb = 1
    grid = (pl.cdiv(B, Bb),)     # ragged tail handled by Pallas partial blocks (no pad)

    out = pl.pallas_call(
        head_kernel,
        out_shape=jax.ShapeDtypeStruct((B, T, H), out_dtype),
        grid_spec=pltpu.PrefetchScalarGridSpec(
            num_scalar_prefetch=0,
            grid=grid,
            in_specs=[
                pl.BlockSpec((Bb, T, C), lambda b: (b, 0, 0)),     # x: Bb sequences/step
                pl.BlockSpec((C, 3 * H), lambda b: (0, 0)),        # fused QKV weight (resident)
            ],
            out_specs=pl.BlockSpec((Bb, T, H), lambda b: (b, 0, 0)),
        ),
        compiler_params=pltpu.CompilerParams(
            dimension_semantics=("parallel",)),                    # megacore-shardable axis
    )(xc, wqkv)
    return out


def head_reference(x, w_key, w_query, w_value):
    # Pure-JAX f32 reference matching the PyTorch forward (eval-mode dropout).
    k = jnp.einsum("btc,hc->bth", x, w_key)
    q = jnp.einsum("btc,hc->bth", x, w_query)
    v = jnp.einsum("btc,hc->bth", x, w_value)
    wei = jnp.einsum("bth,bsh->bts", q, k) * (k.shape[-1] ** -0.5)
    T = x.shape[1]
    tril = jnp.tril(jnp.ones((T, T), dtype=bool))
    wei = jnp.where(tril[None], wei, -jnp.inf)
    wei = jax.nn.softmax(wei, axis=-1)
    return jnp.einsum("bts,bsh->bth", wei, v)


if __name__ == "__main__":
    B, T = 2, 8  # small shapes; T <= block_size
    key = jax.random.PRNGKey(0)
    kx, kk, kq, kv = jax.random.split(key, 4)

    # Deterministic parameter init (nn.Linear-like scale), weight shape (out, in)
    wscale = n_embd ** -0.5
    x = jax.random.normal(kx, (B, T, n_embd), dtype=jnp.float32)
    w_key = jax.random.normal(kk, (head_size, n_embd), dtype=jnp.float32) * wscale
    w_query = jax.random.normal(kq, (head_size, n_embd), dtype=jnp.float32) * wscale
    w_value = jax.random.normal(kv, (head_size, n_embd), dtype=jnp.float32) * wscale

    out = head_forward(x, w_key, w_query, w_value)
    out = jax.block_until_ready(out)

    ref = jax.block_until_ready(head_reference(x, w_key, w_query, w_value))
    assert out.shape == (B, T, head_size)
    # Tolerance relaxed vs the f32-exact reference because the MXU operands (x, weights,
    # attention probabilities) are bfloat16; accumulation and softmax remain f32.
    np.testing.assert_allclose(np.asarray(out), np.asarray(ref), rtol=3e-2, atol=3e-2)

    print("KERNEL_OK")
</pallas_src>

<mosaic_0001>
module attributes {stable_mosaic.version = 11 : i64} {
  func.func @head_kernel(%arg0: i32, %arg1: memref<1x8x384xbf16, #tpu.memory_space<vmem>>, %arg2: memref<384x96xbf16, #tpu.memory_space<vmem>>, %arg3: memref<1x8x32xf32, #tpu.memory_space<vmem>>) attributes {dimension_semantics = [#tpu.dimension_semantics<parallel>], iteration_bounds = array<i64: 2>, scalar_prefetch = 0 : i64, scratch_operands = 0 : i64, tpu.core_type = #tpu.core_type<tc>, window_params = [{transform_indices = @transform_0, window_bounds = array<i64: 1, 8, 384>}, {pipeline_mode = #tpu.pipeline_mode<synchronous>, transform_indices = @transform_1, window_bounds = array<i64: 384, 96>}, {transform_indices = @transform_2, window_bounds = array<i64: 1, 8, 32>}]} {
    %c0 = arith.constant 0 : index
    %c0_0 = arith.constant 0 : index
    %c0_1 = arith.constant 0 : index
    %0 = vector.load %arg1[%c0, %c0_0, %c0_1] : memref<1x8x384xbf16, #tpu.memory_space<vmem>>, vector<1x8x384xbf16>
    %1 = vector.shape_cast %0 : vector<1x8x384xbf16> to vector<8x384xbf16>
    %c0_2 = arith.constant 0 : index
    %c0_3 = arith.constant 0 : index
    %2 = vector.load %arg2[%c0_2, %c0_3] : memref<384x96xbf16, #tpu.memory_space<vmem>>, vector<384x96xbf16>
    %cst = arith.constant dense<0.000000e+00> : vector<8x96xf32>
    %3 = tpu.matmul %1, %2, %cst {dimension_numbers = #tpu.dot_dimension_numbers<[1], [0], [0], [1], [0, 0, 1, 1], [], []>} : vector<8x384xbf16>, vector<384x96xbf16>, vector<8x96xf32> -> vector<8x96xf32>
    %4 = vector.shape_cast %3 : vector<8x96xf32> to vector<1x8x96xf32>
    %5 = arith.truncf %4 : vector<1x8x96xf32> to vector<1x8x96xbf16>
    %6 = vector.extract_strided_slice %5 {offsets = [0, 0, 0], sizes = [1, 8, 32], strides = [1, 1, 1]} : vector<1x8x96xbf16> to vector<1x8x32xbf16>
    %7 = vector.extract_strided_slice %5 {offsets = [0, 0, 32], sizes = [1, 8, 32], strides = [1, 1, 1]} : vector<1x8x96xbf16> to vector<1x8x32xbf16>
    %8 = vector.extract_strided_slice %5 {offsets = [0, 0, 64], sizes = [1, 8, 32], strides = [1, 1, 1]} : vector<1x8x96xbf16> to vector<1x8x32xbf16>
    "tpu.trace_start"() <{level = 10 : i32, message = "bth,bsh->bts"}> : () -> ()
    %cst_4 = arith.constant dense<0.000000e+00> : vector<1x8x8xf32>
    %9 = tpu.matmul %6, %7, %cst_4 {dimension_numbers = #tpu.dot_dimension_numbers<[2], [2], [1], [1], [0, 0, 0, 1, 1, 1], [0], [0]>} : vector<1x8x32xbf16>, vector<1x8x32xbf16>, vector<1x8x8xf32> -> vector<1x8x8xf32>
    "tpu.trace_stop"() : () -> ()
    %10 = tpu.iota {dimensions = array<i32: 0>} : vector<8x8xi32>
    %11 = tpu.iota {dimensions = array<i32: 1>} : vector<8x8xi32>
    %12 = arith.cmpi sle, %11, %10 : vector<8x8xi32>
    %13 = vector.shape_cast %12 : vector<8x8xi1> to vector<1x8x8xi1>
    %cst_5 = arith.constant 0xFF800000 : f32
    %14 = vector.broadcast %cst_5 : f32 to vector<1x8x8xf32>
    %15 = arith.select %13, %9, %14 : vector<1x8x8xi1>, vector<1x8x8xf32>
    %cst_6 = arith.constant dense<0xFF800000> : vector<1x8xf32>
    %16 = vector.multi_reduction <maximumf>, %15, %cst_6 [2] : vector<1x8x8xf32> to vector<1x8xf32>
    %17 = vector.shape_cast %16 : vector<1x8xf32> to vector<1x8x1xf32>
    %18 = vector.broadcast %17 : vector<1x8x1xf32> to vector<1x8x8xf32>
    %19 = arith.subf %15, %18 : vector<1x8x8xf32>
    %20 = math.exp %19 : vector<1x8x8xf32>
    %cst_7 = arith.constant dense<0.000000e+00> : vector<1x8xf32>
    %21 = vector.multi_reduction <add>, %20, %cst_7 [2] : vector<1x8x8xf32> to vector<1x8xf32>
    %22 = vector.shape_cast %21 : vector<1x8xf32> to vector<1x8x1xf32>
    %23 = vector.broadcast %22 : vector<1x8x1xf32> to vector<1x8x8xf32>
    %24 = arith.divf %20, %23 : vector<1x8x8xf32>
    %25 = arith.truncf %24 : vector<1x8x8xf32> to vector<1x8x8xbf16>
    "tpu.trace_start"() <{level = 10 : i32, message = "bts,bsh->bth"}> : () -> ()
    %cst_8 = arith.constant dense<0.000000e+00> : vector<1x8x32xf32>
    %26 = tpu.matmul %25, %8, %cst_8 {dimension_numbers = #tpu.dot_dimension_numbers<[2], [1], [1], [2], [0, 0, 0, 1, 1, 2], [0], [0]>} : vector<1x8x8xbf16>, vector<1x8x32xbf16>, vector<1x8x32xf32> -> vector<1x8x32xf32>
    "tpu.trace_stop"() : () -> ()
    %c0_9 = arith.constant 0 : index
    %c0_10 = arith.constant 0 : index
    %c0_11 = arith.constant 0 : index
    %27 = vector.load %arg3[%c0_9, %c0_10, %c0_11] : memref<1x8x32xf32, #tpu.memory_space<vmem>>, vector<1x8x32xf32>
    tpu.vector_store %arg3[%c0_9, %c0_10, %c0_11], %26 {strides = array<i32>} : memref<1x8x32xf32, #tpu.memory_space<vmem>>, vector<1x8x32xf32>,
    return
  }
  func.func @transform_0(%arg0: i32) -> (i32, i32, i32) {
    %c0_i32 = arith.constant 0 : i32
    %c0_i32_0 = arith.constant 0 : i32
    %c0_i32_1 = arith.constant 0 : i32
    return %arg0, %c0_i32, %c0_i32_0 : i32, i32, i32
  }
  func.func @transform_1(%arg0: i32) -> (i32, i32) {
    %c0_i32 = arith.constant 0 : i32
    %c0_i32_0 = arith.constant 0 : i32
    %c0_i32_1 = arith.constant 0 : i32
    return %c0_i32, %c0_i32_0 : i32, i32
  }
  func.func @transform_2(%arg0: i32) -> (i32, i32, i32) {
    %c0_i32 = arith.constant 0 : i32
    %c0_i32_0 = arith.constant 0 : i32
    %c0_i32_1 = arith.constant 0 : i32
    return %arg0, %c0_i32, %c0_i32_0 : i32, i32, i32
  }
}

</mosaic_0001>

<bundles_post_ra>
// kernel: tpu_custom_call.1
= control target key start
LH: loop header
LB: loop body
LE: loop exit
PB: predicated region body
PF: predicated region fallthrough
CT: control target
= control target key end

     0   :  { %7 = vsyncpa [#allocation3], 0  ;;  %s1080_s0 = inlined_call_operand.vmem [shape: bf16[2,8,384], index: 0, kind: input, shape index: {}]   ;;  %s1081_s1 = inlined_call_operand.vmem [shape: bf16[384,96], index: 1, kind: input, shape index: {}]   ;;  %s1082_s2 = inlined_call_operand.hbm [shape: f32[2,8,32], index: 2, kind: output, shape index: {}]  }
   0x1   :  { %9 = vsyncpa [#allocation3 + $0x1], 0  ;;  %s886_s9 = smov 0   ;;  %s888_s10 = smov 0  }
   0x2   :  { %s890_s11 = smov 0   ;;  %s892_s12 = smov 0  }
   0x3 LB: > { %s907_s13 = sadd.s32 4294967295, %s864_s12   ;;  %s621_s14 = sadd.s32 4294967294, %s864_s12   ;;  %s864_s12 = sphi %s892_s12, %s1088_s12   ;;  %s860_s11 = sphi %s890_s11, %s1087_s11   ;;  %s856_s10 = sphi %s888_s10, %s1086_s10   ;;  %s852_s9 = sphi %s886_s9, %s1085_s9  }
   0x4   : > { %s911_s15 = sadd.s32 1, %s864_s12   ;;  %s69_s16 = sadd.s32 1, %s860_s11 }
   0x5   : > { %s66_s17 = ssub.s32 %s864_s12, %s911_s15  ;;  %p79_p0 = scmp.ne.s32.totalorder %s860_s11, %s856_s10 }
   0x6   : > { %p67_p1 = scmp.eq.s32.totalorder %s66_s17, 0  ;;  %p80_p2 = scmp.eq.s32.totalorder %s907_s13, 1 }
   0x7   : > { %p85_p3 = scmp.ne.s32.totalorder %s856_s10, %s852_s9  ;;  %p86_p4 = scmp.eq.s32.totalorder %s621_s14, 1 }
   0x8   : > { %s922_s18 = scalar_select %p67_p1, %s860_s11, %s69_s16  }
   0x9   : > { %p924_p5 = por %p80_p2, %p79_p0  ;;  %p928_p6 = por %p86_p4, %p85_p3 }
   0xa   : > { %p624_p7 = scmp.ge.s32.totalorder %s864_s12, 1  ;;  %p115_p8 = scmp.lt.s32.totalorder %s864_s12, 3 }
   0xc   : > { %p116_p9 = pnand %p624_p7, %p115_p8 }
   0xd   : > { %v771_v0 = vld [vmem:[%s1081_s1 + $0x40] sm:$0xff] (!%p116_p9)   ;;  %v866_v1 = vmov (!%p116_p9), 0.0   ;;  %v774_v4 = vld [vmem:[%s1081_s1 + $0x48] sm:$0xff] (!%p116_p9)   ;;  %vm867_vm0 = vmmov (!%p116_p9), 0   ;;  %v777_v7 = vld [vmem:[%s1081_s1 + $0x50] sm:$0xff] (!%p116_p9)   ;;  %p137_p10 = scmp.lt.s32.totalorder (!%p116_p9), %s907_s13, 1  ;;  %v479_v42 = vlaneseq (!%p116_p9) }
   0xe   : > { %119 = sbr.rel (%p116_p9) target bundleno = 1144 (0x478), region = 28  ;;  %695 = vmatprep.subr.bf16.mxu1 (!%p116_p9), %v866_v1  ;;  %v772_v2 = vld [vmem:[%s1081_s1] sm:$0xff] (!%p116_p9)   ;;  %660 = vmatprep.subr.bf16.mxu0 (!%p116_p9), %v771_v0  ;;  %v775_v5 = vld [vmem:[%s1081_s1 + $0x8] sm:$0xff] (!%p116_p9)   ;;  %v778_v8 = vld [vmem:[%s1081_s1 + $0x10] sm:$0xff] (!%p116_p9)   ;;  %s868_s8 = smov (!%p116_p9), 96   ;;  %vm432_vm1 = vcmask (!%p116_p9), 261120  }
   0xf   : > { %v773_v3 = vld [vmem:[%s1081_s1 + $0x80] sm:$0xff] (!%p116_p9)   ;;  %661 = vmatpush3.bf16.msra.mxu0 (!%p116_p9), %v772_v2  ;;  %711 = vmatprep.mubr.msk.bf16.mxu1 (!%p116_p9), %vm867_vm0, %v866_v1  ;;  %v776_v6 = vld [vmem:[%s1081_s1 + $0x88] sm:$0xff] (!%p116_p9)   ;;  %v779_v9 = vld [vmem:[%s1081_s1 + $0x90] sm:$0xff] (!%p116_p9)   ;;  %v480_v43 = vshrl.u32 (!%p116_p9), %v479_v42, 7  ;;  %v482_v44 = vand.u32 (!%p116_p9), 127, %v479_v42  ;;  %vm485_vm3 = vcmask (!%p116_p9), 64512  }
  0x10   : > { %696 = vmatpush3.bf16.msra.mxu1 (!%p116_p9), %v773_v3  ;;  %662 = vmatprep.subr.bf16.mxu0 (!%p116_p9), %v774_v4  ;;  %v780_v10 = vld [vmem:[%s1081_s1 + $0x58] sm:$0xff] (!%p116_p9)   ;;  %v783_v13 = vld [vmem:[%s1081_s1 + $0x60] sm:$0xff] (!%p116_p9)   ;;  %v786_v16 = vld [vmem:[%s1081_s1 + $0x68] sm:$0xff] (!%p116_p9)   ;;  %s869_s14 = smov (!%p116_p9), 64   ;;  %vm503_vm4 = vcmask (!%p116_p9), 1043456   ;;  %s134_s16 = sand.u32 (!%p116_p9), 1, %s856_s10  }
  0x11   : > { %697 = vmatprep.subr.bf16.mxu1 (!%p116_p9), %v866_v1  ;;  %v781_v11 = vld [vmem:[%s1081_s1 + $0x18] sm:$0xff] (!%p116_p9)   ;;  %v784_v14 = vld [vmem:[%s1081_s1 + $0x20] sm:$0xff] (!%p116_p9)   ;;  %v787_v17 = vld [vmem:[%s1081_s1 + $0x28] sm:$0xff] (!%p116_p9)   ;;  %vm483_vm2 = vcmp.le.s32.totalorder (!%p116_p9), %v482_v44, %v480_v43  ;;  %s625_s17 = sshll.u32 (!%p116_p9), %s134_s16, 3  ;;  %s657_s21 = sshll.u32 (!%p116_p9), %s907_s13, 7 }
  0x12   : > { %v782_v12 = vld [vmem:[%s1081_s1 + $0x98] sm:$0xff] (!%p116_p9)   ;;  %v785_v15 = vld [vmem:[%s1081_s1 + $0xa0] sm:$0xff] (!%p116_p9)   ;;  %v788_v18 = vld [vmem:[%s1081_s1 + $0xa8] sm:$0xff] (!%p116_p9)   ;;  %s136_s22 = scalar_lea.vmem (!%p116_p9), [#allocation2], %s625_s17  ;;  %s1037_s26 = scalar_lea.hbm (!%p116_p9), %s1082_s2, %s657_s21 }
  0x13   : > { %663 = vmatpush3.bf16.msra.mxu0 (!%p116_p9), %v775_v5  ;;  %v789_v19 = vld [vmem:[%s1081_s1 + $0x70] sm:$0xff] (!%p116_p9)   ;;  %v792_v22 = vld [vmem:[%s1081_s1 + $0x78] sm:$0xff] (!%p116_p9)   ;;  %s562_s23 = sshll.u32 (!%p116_p9), %s136_s22, 4  ;;  %s549_s27 = scalar_lea.sflag (!%p116_p9), [#allocation3], %s134_s16  ;;  %s1039_s23 = int_to_ptr.vmem [resolvable:$true] %s562_s23 }
  0x14   : > { %698 = vmatpush3.bf16.msra.mxu1 (!%p116_p9), %v776_v6  ;;  %664 = vmatprep.subr.bf16.mxu0 (!%p116_p9), %v777_v7  ;;  %v790_v20 = vld [vmem:[%s1081_s1 + $0x30] sm:$0xff] (!%p116_p9)   ;;  %v793_v25 = vld [vmem:[%s1081_s1 + $0x38] sm:$0xff] (!%p116_p9)  }
  0x15   : > { %699 = vmatprep.subr.bf16.mxu1 %v866_v1  ;;  %s138_s28 = scalar_select %p137_p10, %s907_s13, 1  ;;  %v791_v21 = vld [vmem:[%s1081_s1 + $0xb0] sm:$0xff]   ;;  %v794_v26 = vld [vmem:[%s1081_s1 + $0xb8] sm:$0xff]  }
  0x16   : > { %s870_s13 = smov [#allocation2]  }
  0x17   : > { %665 = vmatpush3.bf16.msra.mxu0 %v778_v8  ;;  %s727_s7 = smul.u32 12, %s138_s28  ;;  %s802_s28 = scalar_lea.vmem %s1039_s23, 128 }
  0x18   : > { %700 = vmatpush3.bf16.msra.mxu1 %v779_v9  ;;  %666 = vmatprep.subr.bf16.mxu0 %v780_v10  ;;  %p803_p11 = scmp.ne.s32.totalorder %s1039_s23, %s802_s28  ;;  %s806_s29 = sshll.u32 %s870_s13, 4  ;;  %s807_s29 = int_to_ptr.vmem [resolvable:$false] %s806_s29 }
  0x19   : > { %701 = vmatprep.subr.bf16.mxu1 %v866_v1  ;;  %s141_s25 = scalar_lea.vmem %s1080_s0, %s727_s7  ;;  %s808_s30 = scalar_lea.vmem %s807_s29, 256 }
  0x1a   : > { %v143_v23 = vld [vmem:[%s141_s25] sm:$0xff]  ;;  %v797_v28 = vld [vmem:[%s141_s25 + $0x8] ss:$0 sps:$4 sm:$0xff]   ;;  %p804_p12 = pnand %p803_p11, %p924_p5  ;;  %p809_p0 = scmp.lt.s32.totalorder %s1039_s23, %s807_s29 }
  0x1b   : > { %667 = vmatpush3.bf16.msra.mxu0 %v781_v11  ;;  %v628_v24 = vcombine.high %v143_v23, %v143_v23  ;;  %v627_v27 = vcombine.low %v143_v23, %v143_v23  ;;  %p810_p1 = scmp.lt.s32.totalorder %s808_s30, %s802_s28 }
  0x1c   : > { %702 = vmatpush3.bf16.msra.mxu1 %v782_v12  ;;  %668 = vmatprep.subr.bf16.mxu0 %v783_v13  ;;  %p805_p13 = pneg %p804_p12 }
  0x1d   : > { %703 = vmatprep.subr.bf16.mxu1 %v866_v1  ;;  %380 = vmatprep.mubr.bf16.mxu0 %v628_v24  ;;  %p811_p2 = por %p810_p1, %p809_p0 }
  0x1f   : > { %669 = vmatpush3.bf16.msra.mxu0 %v784_v14  ;;  %p812_p3 = pnand %p811_p2, %p805_p13 }
  0x20   : > { %704 = vmatpush3.bf16.msra.mxu1 %v785_v15  ;;  %670 = vmatprep.subr.bf16.mxu0 %v786_v16 }
  0x21   : > { %705 = vmatprep.subr.bf16.mxu1 %v866_v1 }
  0x23   : > { %671 = vmatpush3.bf16.msra.mxu0 %v787_v17 }
  0x24   : > { %706 = vmatpush3.bf16.msra.mxu1 %v788_v18  ;;  %672 = vmatprep.subr.bf16.mxu0 %v789_v19 }
  0x25   : > { %707 = vmatprep.subr.bf16.mxu1 %v866_v1 }
  0x27   : > { %673 = vmatpush3.bf16.msra.mxu0 %v790_v20 }
  0x28   : > { %708 = vmatpush3.bf16.msra.mxu1 %v791_v21  ;;  %674 = vmatprep.subr.bf16.mxu0 %v792_v22 }
  0x29   : > { %709 = vmatprep.subr.bf16.mxu1 %v866_v1 }
  0x2b   : > { %675 = vmatpush3.bf16.msra.mxu0 %v793_v25 }
  0x2c   : > { %710 = vmatpush3.bf16.msra.mxu1 %v794_v26  ;;  %715 = vmatprep.subr.bf16.mxu0 %v866_v1 }
  0x2d   : > { %721 = vmatprep.subr.bf16.mxu1 %v866_v1 }
  0x2e   : > { %381 = vmatmul.mubr.bf16.vlgmr.msra.gmra.mrb[0].mxu0 %v627_v27 }
  0x2f   : > { %712 = vmatmul.mubr.bf16.vlgmr.msra.gmra.mrb[0].mxu1 %v797_v28  ;;  %717 = vmatprep.mubr.msk.bf16.mxu0 %vm867_vm0, %v866_v1 }
  0x30   : > { %723 = vmatprep.mubr.msk.bf16.mxu1 %vm867_vm0, %v866_v1 }
 0x101   : > { %v676_v29 = vpop.f32.mrb[0].mxu0 }
 0x102   : > { %v422_v30 = vpop.f32.mrb[0].mxu1  ;;  %v677_v31 = vpop.f32.mrb[1].mxu0 }
 0x103   : > { %v678_v32 = vadd.f32 %v677_v31, %v676_v29  ;;  %v713_v33 = vpop.f32.mrb[1].mxu1  ;;  %v679_v34 = vpop.f32.mrb[2].mxu0 }
 0x104   : > { %v425_v35 = vpop.f32.mrb[2].mxu1  ;;  %v680_v36 = vpop.f32.mrb[3].mxu0 }
 0x105   : > { %v423_v37 = vadd.f32 %v678_v32, %v422_v30  ;;  %v714_v38 = vpop.f32.mrb[3].mxu1 }
 0x107   : > { %v428_v39 = vpack.c.bf16 %v423_v37, %v423_v37 }
 0x109   : > { %430 = vrot.lane.b32.xlu0 %v428_v39, %s868_s8 }
 0x17b   : > { %v431_v40 = vpop.permute.xlu0 %430 }
 0x17c   : > { %v437_v41 = vsel %vm432_vm1, %v431_v40, 0 }
 0x17d   : > { %716 = vmatpush3.bf16.xpose.msra.mxu0 %v437_v41 }
 0x184   : > { %718 = vmatmul.mubr.msk.bf16.vlgmr.msra.gmra.mrb[4].mxu0 %vm432_vm1, %v428_v39 }
 0x257   : > { %v473_v45 = vpop.f32.mrb[4].mxu0 }
 0x258   : > { %v484_v46 = vsel %vm483_vm2, %v473_v45, -inf  ;;  %v719_v47 = vpop.f32.mrb[5].mxu0 }
 0x259   : > { %v476_v48 = vpop.f32.mrb[6].mxu0  ;;  %v486_v49 = vsel %vm485_vm3, %v484_v46, -inf }
 0x25a   : > { %487 = vmax.xlane.f32.xlu0 %v486_v49  ;;  %v720_v50 = vpop.f32.mrb[7].mxu0 }
 0x2e7   : > { %v488_v51 = vpop.xlane.xlu0 %487 }
 0x2e8   : > { %v489_v52 = vsub.f32 %v484_v46, %v488_v51 }
 0x2ea   : > { %v490_v53 = vmul.f32 1.442695, %v489_v52 }
 0x2ec   : > { %798 = vpow2.f32 %v490_v53 }
 0x2f6   : > { %v799_v54 = vpop.eup %798 }
 0x2f7   : > { %v492_v55 = vsel %vm485_vm3, %v799_v54, 0.0 }
 0x2f8   : > { %493 = vadd.xlane.f32.xlu1 %v492_v55 }
 0x309   : > { %498 = vrot.lane.b32.xlu1 %v428_v39, %s869_s14 }
 0x385   : > { %v494_v56 = vpop.xlane.xlu1 %493 }
 0x386   : > { %800 = vrcp.f32 %v494_v56 }
 0x389   : > { %v499_v57 = vpop.permute.xlu1 %498 }
 0x38a   : > { %v505_v58 = vsel %vm503_vm4, %v499_v57, 0 }
 0x38b   : > { %722 = vmatpush3.bf16.msra.mxu1 %v505_v58 }
 0x390   : > { %v801_v59 = vpop.eup %800 }
 0x391   : > { %v496_v60 = vmul.f32 %v801_v59, %v799_v54 }
 0x393   : > { %v497_v61 = vpack.c.bf16 %v496_v60, %v496_v60 }
 0x395   : > { %724 = vmatmul.mubr.msk.bf16.vlgmr.msra.gmra.mrb[4].mxu1 %vm485_vm3, %v497_v61 }
 0x468   : > { %v541_v62 = vpop.f32.mrb[4].mxu1 }
 0x469   : > { %547 = vst.msk [vmem:[%s136_s22] sm:$0xff] %vm432_vm1, %v541_v62  ;;  %v725_v63 = vpop.f32.mrb[5].mxu1 }
 0x46a   : > { %v544_v0 = vpop.f32.mrb[6].mxu1 }
 0x46b   : > { %815 = shalt.err (!%p812_p3)
}
 0x46c   : > { %s816_s3 = scalar_lea.hbm %s1037_s26, 128  ;;  %s820_s6 = scalar_lea.hbm %s1082_s2, 256 }
 0x46d   : > { %p817_p4 = scmp.ne.s32.totalorder %s1037_s26, %s816_s3  ;;  %p821_p9 = scmp.lt.u32.totalorder %s1037_s26, %s1082_s2 }
 0x46e   : > { %p822_p10 = scmp.lt.u32.totalorder %s820_s6, %s816_s3  ;;  %p824_p12 = scmp.lt.u32.totalorder %s816_s3, %s1037_s26 }
 0x46f   : > { %p818_p7 = pnand %p817_p4, %p924_p5 }
 0x470   : > { %p823_p11 = por %p822_p10, %p821_p9 }
 0x471   : > { %p819_p8 = pneg %p818_p7 }
 0x472   : > { %p825_p13 = por %p824_p12, %p823_p11 }
 0x474   : > { %p826_p0 = pnand %p825_p13, %p819_p8 }
 0x476   : > { %829 = shalt.err (!%p826_p0)
}
 0x477   : > { %728 = dma.vmem_to_hbm [thread:$0]  (%p924_p5), %s1039_s23, 128, %s1037_s26, %s549_s27   ;;  %v726_v1 = vpop.f32.mrb[7].mxu1 }
 0x478 PF: > { %p734_p1 = scmp.ge.s32.totalorder %s864_s12, 2  ;;  %s574_s14 = sand.u32 1, %s852_s9  }
 0x479   : > { %s575_s16 = scalar_lea.sflag [#allocation3], %s574_s14 }
 0x47a   : > { %p731_p2 = pnand %p734_p1, %p928_p6 }
 0x47c   : > { %847 = dma.done.wait (!%p731_p2), %s575_s16, 128  }
 0x47d   : > { %849 = vsyncadd (!%p731_p2), %s575_s16, 4294967168  ;;  %p12_p3 = scmp.ge.s32.totalorder %s911_s15, 4   ;;  %s1085_s9 = smov %s856_s10 }
 0x47e   : > { %s1086_s10 = smov %s860_s11  ;;  %s1087_s11 = smov %s922_s18 }
 0x47f   : > { %s1088_s12 = smov %s911_s15  ;;  %14 = sbr.rel (!%p12_p3) target bundleno = 3 (0x3), region = 63 }
 0x486   :  { %580 = vsyncpa [#allocation3], 1 }
 0x487   :  { %582 = vsyncpa [#allocation3 + $0x1], 1 }

</bundles_post_ra>
